<compile_context>
chip_gen: v5e
topology: v5e:2x2
jax: 0.10.0
libtpu: 0.0.40
codegen_flags: <defaults>
</compile_context>

<pallas_src>
import copy
import functools

import jax
import jax.numpy as jnp
from jax import lax
from jax.experimental import pallas as pl
from jax.experimental.pallas import tpu as pltpu


# ----------------------------------------------------------------------------
# Block-size helpers
# ----------------------------------------------------------------------------
_VMEM_BLOCK_BUDGET = 2 * 1024 * 1024  # bytes per single block buffer; with
                                      # 3 streams x double buffering stays well
                                      # under the 16/32 MiB scoped VMEM default.


def _sublane_align(dtype):
    """Min sublane tile for the dtype (8 f32 / 16 bf16 / 32 int8)."""
    return {4: 8, 2: 16, 1: 32}.get(jnp.dtype(dtype).itemsize, 8)


def _pick_block(dim, align, target):
    """Largest multiple of `align` that divides `dim` and is <= target.

    Callers zero-pad to `align` first, so the full-extent fallback (always
    legal w.r.t. the (8,128) rule) only triggers for already-small dims.
    """
    if dim % align != 0:
        return dim
    b = max(align, min(dim, (target // align) * align))
    while dim % b != 0:
        b -= align
    return b


def _pad2d(x2, row_align, lane_align=128):
    """Zero-pad a 2-D array so both dims hit their min-tile alignment."""
    r, t = x2.shape
    rp = ((r + row_align - 1) // row_align) * row_align
    tp = ((t + lane_align - 1) // lane_align) * lane_align
    if (rp, tp) != (r, t):
        x2 = jnp.pad(x2, ((0, rp - r), (0, tp - t)))
    return x2


# ----------------------------------------------------------------------------
# Kernel 1a: global (Σx, Σx²) reduction (for unbiased std).
#   2-D "arbitrary" grid, SMEM scalar accumulators persist across the grid,
#   output written once at the final block.  Zero padding keeps both sums exact.
# ----------------------------------------------------------------------------
def _stats_kernel(x_ref, sums_ref, acc_ref):
    i = pl.program_id(0)
    j = pl.program_id(1)

    @pl.when(jnp.logical_and(i == 0, j == 0))
    def _():
        acc_ref[0] = jnp.float32(0.0)
        acc_ref[1] = jnp.float32(0.0)

    x = x_ref[...].astype(jnp.float32)
    acc_ref[0] += jnp.sum(x)
    acc_ref[1] += jnp.sum(x * x)

    @pl.when(jnp.logical_and(i == pl.num_programs(0) - 1,
                             j == pl.num_programs(1) - 1))
    def _():
        sums_ref[0] = acc_ref[0]
        sums_ref[1] = acc_ref[1]


def _global_sums_pallas(x2):
    align = _sublane_align(x2.dtype)
    x2p = _pad2d(x2, align)
    R, T = x2p.shape
    itemsize = jnp.dtype(x2p.dtype).itemsize

    bt = _pick_block(T, 128, 2048)
    row_target = max(align, _VMEM_BLOCK_BUDGET // max(bt * itemsize, 1))
    br = _pick_block(R, align, row_target)

    # TODO(synk): on v7x (2 TCs) a leading size-2 "parallel" axis with per-core
    # partial sums combined in the wrapper would ~2x this HBM-bound pass.
    return pl.pallas_call(
        _stats_kernel,
        out_shape=jax.ShapeDtypeStruct((2,), jnp.float32),
        grid=(R // br, T // bt),
        in_specs=[pl.BlockSpec((br, bt), lambda i, j: (i, j))],
        out_specs=pl.BlockSpec(memory_space=pltpu.MemorySpace.SMEM),
        scratch_shapes=[pltpu.SMEM((2,), jnp.float32)],
        compiler_params=pltpu.CompilerParams(
            dimension_semantics=("arbitrary", "arbitrary")),
    )(x2p)


def global_std_pallas(x):
    """torch.std(x) (unbiased, all elements) via the Pallas reduction kernel."""
    x = jnp.asarray(x)
    x2 = x.reshape(-1, x.shape[-1])
    sums = _global_sums_pallas(x2)
    n = x2.size
    denom = max(n - 1, 1)
    # One-pass variance: var = (Σx² − (Σx)²/n) / (n−1), f32 accumulation.
    # TODO(synk): switch to a shifted / per-block Welford combine for very
    # large |mean|/std ratios (catastrophic cancellation guard).
    var = (sums[1] - sums[0] * sums[0] / n) / denom
    return jnp.sqrt(jnp.maximum(var, 0.0))


# ----------------------------------------------------------------------------
# Kernel 1b: fused augmentation  out = x*sign + std*noise
#   std + sign come in as SMEM scalars; x and noise tiles stream through a
#   2-D "parallel" grid with lane-dense blocks.
# ----------------------------------------------------------------------------
def _augment_kernel(params_ref, x_ref, noise_ref, o_ref):
    sign = params_ref[0]
    std = params_ref[1]
    o_ref[...] = (x_ref[...].astype(jnp.float32) * sign
                  + std * noise_ref[...].astype(jnp.float32)).astype(o_ref.dtype)


def default_augmentation_pallas(x, sign, key):
    """Pallas version of selfeeg.ssl.base._default_augmentation.

    out = x * sign + std(x, ddof=1) * N(0,1) noise.
    The random sign is decided by the caller (mirrors random.choice([-1,1]));
    the gaussian noise comes from jax.random (same distribution as torch.randn,
    different stream).
    TODO(synk): on-chip noise (pltpu.prng_seed / stateful_normal) would remove
    the noise HBM stream but has no interpret-mode lowering, so it is streamed.
    TODO(synk): for VMEM-resident minibatches the stats and augment passes
    could be fused into one pallas_call to cut one HBM read of x.
    """
    x = jnp.asarray(x)
    orig_shape = x.shape
    x2 = x.reshape(-1, orig_shape[-1])
    R, T = x2.shape

    std = global_std_pallas(x2)
    noise = jax.random.normal(key, orig_shape, dtype=jnp.float32).reshape(R, T)

    params = jnp.stack([jnp.asarray(sign, jnp.float32).reshape(()),
                        std.astype(jnp.float32)])

    align = _sublane_align(x.dtype)
    Rp = ((R + align - 1) // align) * align
    Tp = ((T + 127) // 128) * 128
    if (Rp, Tp) != (R, T):
        x2p = jnp.pad(x2, ((0, Rp - R), (0, Tp - T)))
        noisep = jnp.pad(noise, ((0, Rp - R), (0, Tp - T)))
    else:
        x2p, noisep = x2, noise

    bt = _pick_block(Tp, 128, 2048)                     # lane-dense tile
    row_target = max(align, _VMEM_BLOCK_BUDGET // max(bt * 4, 1))
    br = _pick_block(Rp, align, row_target)

    out2 = pl.pallas_call(
        _augment_kernel,
        out_shape=jax.ShapeDtypeStruct((Rp, Tp), x.dtype),
        grid=(Rp // br, Tp // bt),
        in_specs=[
            pl.BlockSpec(memory_space=pltpu.MemorySpace.SMEM),   # [sign, std]
            pl.BlockSpec((br, bt), lambda i, j: (i, j)),         # x tile
            pl.BlockSpec((br, bt), lambda i, j: (i, j)),         # noise tile
        ],
        out_specs=pl.BlockSpec((br, bt), lambda i, j: (i, j)),
        compiler_params=pltpu.CompilerParams(
            dimension_semantics=("parallel", "parallel")),
    )(params, x2p, noisep)

    if (Rp, Tp) != (R, T):
        out2 = out2[:R, :T]
    return out2.reshape(orig_shape)


# ----------------------------------------------------------------------------
# Kernel 2: SimCLR (NT-Xent) loss — the `evaluate_loss` hot path.
#   z   = l2_normalize(proj, axis=1)          (hoisted to the wrapper)
#   sim = (z @ z.T) / temperature             (diagonal excluded)
#   positive pair of row i is row (i + N/2) mod N
#   loss = mean_i [ logsumexp_{j != i} sim[i, j] - sim[i, pos(i)] ]
# ----------------------------------------------------------------------------
def _simclr_kernel(zk_ref, zq_ref, zp_ref, loss_ref, *, inv_temp):
    i = pl.program_id(0)
    bq = zq_ref.shape[0]
    n = zk_ref.shape[0]
    row0 = i * bq

    # bf16 operands for the MXU; 1/temperature folded into the query rows so
    # the (bq, n) similarity needs no post-scale.
    q = zq_ref[...] * inv_temp                          # (bq, Dp) bf16
    k = zk_ref[...]                                     # (n,  Dp) bf16, resident
    sim = lax.dot_general(q, k,
                          dimension_numbers=(((1,), (1,)), ((), ())),
                          preferred_element_type=jnp.float32)   # (bq, n) f32

    grow = lax.broadcasted_iota(jnp.int32, (bq, n), 0) + row0
    col = lax.broadcasted_iota(jnp.int32, (bq, n), 1)
    sim_masked = jnp.where(col == grow, jnp.float32(-1e30), sim)

    m = jnp.max(sim_masked, axis=1, keepdims=True)
    lse = m + jnp.log(jnp.sum(jnp.exp(sim_masked - m), axis=1, keepdims=True))

    # Positive similarity directly from the pre-rolled positive block:
    # O(bq*Dp) instead of an O(bq*n) compare/select + cross-lane reduce.
    pos = jnp.sum(q.astype(jnp.float32) * zp_ref[...].astype(jnp.float32),
                  axis=1, keepdims=True)

    block_loss = jnp.sum(lse - pos)                     # scalar, this query block
    loss_ref[...] = jnp.zeros(loss_ref.shape, jnp.float32) + block_loss


def simclr_loss_pallas(projections, projections2=None, temperature=0.15,
                       block_q=None):
    """SimCLR / NT-Xent loss (selfeeg.losses.simclr_loss semantics)."""
    z = projections
    if projections2 is not None:
        z = jnp.concatenate([projections, projections2], axis=0)
    z = jnp.asarray(z, jnp.float32)
    n, d = z.shape
    if n % 2 != 0:
        raise ValueError("SimCLR expects an even number of projections")
    half = n // 2

    # Hoisted: L2-normalize ONCE (not once per query block), pad the feature
    # dim to a lane multiple, cast keys/queries to bf16 for the MXU.
    inv_norm = lax.rsqrt(jnp.maximum(jnp.sum(z * z, axis=1, keepdims=True),
                                     1e-24))
    zn = z * inv_norm
    dp = max(128, ((d + 127) // 128) * 128)
    if dp != d:
        zn = jnp.pad(zn, ((0, 0), (0, dp - d)))
    zk = zn.astype(jnp.bfloat16)
    zpos = jnp.roll(zk, -half, axis=0)   # row i of zpos == positive key of row i

    bq = block_q if block_q is not None else _pick_block(n, 8, 256)
    if n % bq != 0:
        bq = n
    num_blocks = n // bq

    # TODO(synk): for very large N add a key-block "arbitrary" axis with an
    # online (flash-style) LSE so the (bq, N) temporaries and resident keys
    # stay under v7x's 32 MiB scoped VMEM default.
    out = pl.pallas_call(
        functools.partial(_simclr_kernel, inv_temp=1.0 / float(temperature)),
        out_shape=jax.ShapeDtypeStruct((num_blocks, 8, 128), jnp.float32),
        grid=(num_blocks,),
        in_specs=[
            pl.BlockSpec((n, dp), lambda i: (0, 0)),     # keys: VMEM-resident
            pl.BlockSpec((bq, dp), lambda i: (i, 0)),    # query block
            pl.BlockSpec((bq, dp), lambda i: (i, 0)),    # positive key block
        ],
        out_specs=pl.BlockSpec((1, 8, 128), lambda i: (i, 0, 0)),  # lane-dense
        compiler_params=pltpu.CompilerParams(
            dimension_semantics=("parallel",)),
    )(zk, zk, zpos)
    return jnp.sum(out[:, 0, 0]) / n


# ----------------------------------------------------------------------------
# SSLBase: JAX mirror of the PyTorch module (glue / dispatcher logic).
# ----------------------------------------------------------------------------
class SSLBase:
    def __init__(self, encoder=None):
        self.encoder = encoder
        self._sslname = "base"

    def forward(self, x):
        # The PyTorch module's forward() is `pass` (subclasses override it).
        pass

    def __call__(self, x):
        return self.forward(x)

    def evaluate_loss(self, loss_fun, arguments, loss_arg=None):
        if isinstance(arguments, list):
            if loss_arg is None or loss_arg == []:
                loss = loss_fun(*arguments)
            elif isinstance(loss_arg, dict):
                loss = loss_fun(*arguments, **loss_arg)
            else:
                loss = loss_fun(*arguments, *loss_arg)
        elif loss_arg is None or loss_arg == []:
            loss = loss_fun(arguments)
        elif isinstance(loss_arg, dict):
            loss = loss_fun(arguments, **loss_arg)
        else:
            loss = loss_fun(arguments, *loss_arg)
        return loss

    def get_encoder(self, device="cpu"):
        return copy.deepcopy(self.encoder)

    # TODO(synk): save_encoder / _set_fit_args / _set_test_args are file-I/O and
    # DataLoader/optimizer plumbing with no Pallas equivalent; omitted.


# ----------------------------------------------------------------------------
# Pure-JAX reference for correctness checking.
# ----------------------------------------------------------------------------
def _simclr_ref(proj, temperature=0.15):
    n = proj.shape[0]
    zn = proj / jnp.maximum(jnp.linalg.norm(proj, axis=1, keepdims=True), 1e-12)
    sim = (zn @ zn.T) / temperature
    diag = jnp.eye(n, dtype=bool)
    sim_masked = jnp.where(diag, -1e30, sim)
    lse = jax.scipy.special.logsumexp(sim_masked, axis=1)
    pos_idx = (jnp.arange(n) + n // 2) % n
    pos = sim[jnp.arange(n), pos_idx]
    return jnp.mean(lse - pos)


if __name__ == "__main__":
    key = jax.random.PRNGKey(0)
    k_x, k_sign, k_noise, k_proj = jax.random.split(key, 4)

    # --- _default_augmentation path (EEG-like batch, layout (B, C, T)) ---
    x = 0.5 * jax.random.normal(k_x, (2, 8, 256), dtype=jnp.float32) + 0.1
    sign = jnp.where(jax.random.bernoulli(k_sign), 1.0, -1.0).astype(jnp.float32)

    aug = default_augmentation_pallas(x, sign, k_noise)
    aug = jax.block_until_ready(aug)
    assert aug.shape == x.shape and aug.dtype == x.dtype

    # Check the hoisted std reduction against jnp (torch.std ddof=1 semantics).
    std_ref = jnp.std(x, ddof=1)
    std_k = global_std_pallas(x)
    assert jnp.allclose(std_k, std_ref, rtol=1e-4, atol=1e-6), "std mismatch"

    # Noise stream is reproducible from the key -> exact elementwise check.
    noise_ref = jax.random.normal(k_noise, x.shape, dtype=jnp.float32)
    aug_ref = x * sign + std_ref * noise_ref
    assert jnp.allclose(aug, aug_ref, rtol=1e-4, atol=1e-5), "augmentation mismatch"

    # --- evaluate_loss path (docstring example: projections of shape (64, 32)) ---
    base = SSLBase(encoder=None)
    a = jax.random.normal(k_proj, (64, 32), dtype=jnp.float32)
    loss = base.evaluate_loss(simclr_loss_pallas, [a], {"temperature": 0.15})
    loss = jax.block_until_ready(loss)
    loss_ref = _simclr_ref(a, temperature=0.15)
    # bf16 MXU operands (f32 accumulate) -> loose tolerance vs the f32 reference.
    assert jnp.allclose(loss, loss_ref, rtol=3e-2, atol=3e-2), "simclr loss mismatch"

    # Multi query-block grid path (row offsets + rolled positive blocks).
    loss_blk = simclr_loss_pallas(a, temperature=0.15, block_q=16)
    loss_blk = jax.block_until_ready(loss_blk)
    assert jnp.allclose(loss_blk, loss_ref, rtol=3e-2, atol=3e-2), \
        "blocked simclr loss mismatch"

    print("KERNEL_OK")
</pallas_src>

<mosaic_0001>
module attributes {stable_mosaic.version = 11 : i64} {
  func.func @_stats_kernel(%arg0: i32, %arg1: i32, %arg2: memref<16x256xf32, #tpu.memory_space<vmem>>, %arg3: memref<2xf32, #tpu.memory_space<smem>>, %arg4: memref<2xf32, #tpu.memory_space<smem>>) attributes {dimension_semantics = [#tpu.dimension_semantics<arbitrary>, #tpu.dimension_semantics<arbitrary>], iteration_bounds = array<i64: 1, 1>, scalar_prefetch = 0 : i64, scratch_operands = 1 : i64, tpu.core_type = #tpu.core_type<tc>, window_params = [{transform_indices = @transform_0, window_bounds = array<i64: 16, 256>}, {transform_indices = @transform_1, window_bounds = array<i64: 2>}]} {
    %c0_i32 = arith.constant 0 : i32
    %0 = arith.cmpi eq, %arg0, %c0_i32 : i32
    %c0_i32_0 = arith.constant 0 : i32
    %1 = arith.cmpi eq, %arg1, %c0_i32_0 : i32
    %2 = arith.andi %0, %1 : i1
    %3 = arith.extui %2 : i1 to i32
    %c0_i32_1 = arith.constant 0 : i32
    %4 = arith.cmpi ne, %3, %c0_i32_1 : i32
    scf.if %4 {
      %cst_10 = arith.constant 0.000000e+00 : f32
      %c0_11 = arith.constant 0 : index
      %26 = memref.load %arg4[%c0_11] : memref<2xf32, #tpu.memory_space<smem>>
      memref.store %cst_10, %arg4[%c0_11] : memref<2xf32, #tpu.memory_space<smem>>
      %cst_12 = arith.constant 0.000000e+00 : f32
      %c1_13 = arith.constant 1 : index
      %27 = memref.load %arg4[%c1_13] : memref<2xf32, #tpu.memory_space<smem>>
      memref.store %cst_12, %arg4[%c1_13] : memref<2xf32, #tpu.memory_space<smem>>
    } else {
    }
    %c0 = arith.constant 0 : index
    %c0_2 = arith.constant 0 : index
    %5 = vector.load %arg2[%c0, %c0_2] : memref<16x256xf32, #tpu.memory_space<vmem>>, vector<16x256xf32>
    %c0_3 = arith.constant 0 : index
    %6 = memref.load %arg4[%c0_3] : memref<2xf32, #tpu.memory_space<smem>>
    %7 = vector.shape_cast %5 : vector<16x256xf32> to vector<1x16x256xf32>
    %cst = arith.constant dense<0.000000e+00> : vector<1xf32>
    %8 = vector.multi_reduction <add>, %7, %cst [1, 2] : vector<1x16x256xf32> to vector<1xf32>
    %9 = vector.shape_cast %8 : vector<1xf32> to vector<1x1x1xf32>
    %10 = vector.extract %9[0, 0, 0] : f32 from vector<1x1x1xf32>
    %11 = arith.addf %6, %10 : f32
    %c0_4 = arith.constant 0 : index
    %12 = memref.load %arg4[%c0_4] : memref<2xf32, #tpu.memory_space<smem>>
    memref.store %11, %arg4[%c0_4] : memref<2xf32, #tpu.memory_space<smem>>
    %c1 = arith.constant 1 : index
    %13 = memref.load %arg4[%c1] : memref<2xf32, #tpu.memory_space<smem>>
    %14 = arith.mulf %5, %5 : vector<16x256xf32>
    %15 = vector.shape_cast %14 : vector<16x256xf32> to vector<1x16x256xf32>
    %cst_5 = arith.constant dense<0.000000e+00> : vector<1xf32>
    %16 = vector.multi_reduction <add>, %15, %cst_5 [1, 2] : vector<1x16x256xf32> to vector<1xf32>
    %17 = vector.shape_cast %16 : vector<1xf32> to vector<1x1x1xf32>
    %18 = vector.extract %17[0, 0, 0] : f32 from vector<1x1x1xf32>
    %19 = arith.addf %13, %18 : f32
    %c1_6 = arith.constant 1 : index
    %20 = memref.load %arg4[%c1_6] : memref<2xf32, #tpu.memory_space<smem>>
    memref.store %19, %arg4[%c1_6] : memref<2xf32, #tpu.memory_space<smem>>
    %c0_i32_7 = arith.constant 0 : i32
    %21 = arith.cmpi eq, %arg0, %c0_i32_7 : i32
    %c0_i32_8 = arith.constant 0 : i32
    %22 = arith.cmpi eq, %arg1, %c0_i32_8 : i32
    %23 = arith.andi %21, %22 : i1
    %24 = arith.extui %23 : i1 to i32
    %c0_i32_9 = arith.constant 0 : i32
    %25 = arith.cmpi ne, %24, %c0_i32_9 : i32
    scf.if %25 {
      %c0_10 = arith.constant 0 : index
      %26 = memref.load %arg4[%c0_10] : memref<2xf32, #tpu.memory_space<smem>>
      %c0_11 = arith.constant 0 : index
      %27 = memref.load %arg3[%c0_11] : memref<2xf32, #tpu.memory_space<smem>>
      memref.store %26, %arg3[%c0_11] : memref<2xf32, #tpu.memory_space<smem>>
      %c1_12 = arith.constant 1 : index
      %28 = memref.load %arg4[%c1_12] : memref<2xf32, #tpu.memory_space<smem>>
      %c1_13 = arith.constant 1 : index
      %29 = memref.load %arg3[%c1_13] : memref<2xf32, #tpu.memory_space<smem>>
      memref.store %28, %arg3[%c1_13] : memref<2xf32, #tpu.memory_space<smem>>
    } else {
    }
    return
  }
  func.func @transform_0(%arg0: i32, %arg1: i32) -> (i32, i32) {
    %c0_i32 = arith.constant 0 : i32
    return %arg0, %arg1 : i32, i32
  }
  func.func @transform_1(%arg0: i32, %arg1: i32) -> i32 {
    %c0_i32 = arith.constant 0 : i32
    %c0_i32_0 = arith.constant 0 : i32
    return %c0_i32 : i32
  }
}

</mosaic_0001>

<bundles_post_ra>
// kernel: tpu_custom_call.1
= control target key start
LH: loop header
LB: loop body
LE: loop exit
PB: predicated region body
PF: predicated region fallthrough
CT: control target
= control target key end

     0   :  { %6 = vsyncpa [#allocation4], 0  ;;  %s169_s0 = inlined_call_operand.hbm [shape: f32[16,256], index: 0, kind: input, shape index: {}]   ;;  %s170_s1 = inlined_call_operand.hbm [shape: f32[2], index: 1, kind: output, shape index: {}]  }
   0x1   :  { %7 = vsyncpa [#allocation5], 0  ;;  %s12_s8 = sshll.u32 %s169_s0, 4  ;;  %s149_s9 = smov [#allocation3]   ;;  %s13_s8 = int_to_ptr.hbm [resolvable:$true] %s12_s8 }
   0x2   :  { %s14_s10 = sshll.u32 %s149_s9, 4  ;;  %s150_s11 = smov 256   ;;  %s15_s10 = int_to_ptr.vmem [resolvable:$true] %s14_s10 }
   0x3   :  { %s151_s12 = smov 16  }
   0x4   :  { %20 = dma.hbm_to_vmem [thread:$0]  %s13_s8, 512, %s15_s10, [#allocation4], %s150_s11, %s150_s11, %s151_s12  }
   0x5   :  { %145 = dma.done.wait [#allocation4], 512  }
   0x6   :  { %146 = vsyncadd [#allocation4], 4294966784  ;;  %v35_v0 = vld [vmem:[#allocation3] sm:$0xff]  ;;  %v36_v1 = vld [vmem:[#allocation3 + $0x8] sm:$0xff]  ;;  %s88_s15 = sshll.u32 %s170_s1, 4  ;;  %s152_s17 = smov [#allocation6]   ;;  %s89_s15 = int_to_ptr.hbm [resolvable:$true] %s88_s15 }
   0x7   :  { %v37_v2 = vld [vmem:[#allocation3 + $0x10] sm:$0xff]  ;;  %v40_v3 = vadd.f32 %v36_v1, %v35_v0  ;;  %v56_v4 = vmul.f32 %v35_v0, %v35_v0  ;;  %v57_v5 = vmul.f32 %v36_v1, %v36_v1  ;;  %v38_v6 = vld [vmem:[#allocation3 + $0x18] sm:$0xff] }
   0x8   :  { %v58_v8 = vmul.f32 %v37_v2, %v37_v2  ;;  %v59_v11 = vmul.f32 %v38_v6, %v38_v6 }
   0x9   :  { %v41_v7 = vadd.f32 %v40_v3, %v37_v2  ;;  %v60_v9 = vadd.f32 %v57_v5, %v56_v4 }
   0xb   :  { %v42_v10 = vadd.f32 %v41_v7, %v38_v6  ;;  %v61_v12 = vadd.f32 %v60_v9, %v58_v8 }
   0xd   :  { %43 = vadd.xlane.f32.xlu0 %v42_v10  ;;  %v62_v13 = vadd.f32 %v61_v12, %v59_v11 }
  0x15   :  { %63 = vadd.xlane.f32.xlu0 %v62_v13 }
  0x80   :  { %v44_v14 = vpop.xlane.xlu0 %43 }
  0x81   :  { %v45_v15 = vrot.slane %v44_v14, 4 }
  0x83   :  { %v46_v16 = vadd.f32 %v45_v15, %v44_v14 }
  0x85   :  { %v47_v17 = vrot.slane %v46_v16, 2 }
  0x87   :  { %v48_v18 = vadd.f32 %v47_v17, %v46_v16 }
  0x88   :  { %v64_v19 = vpop.xlane.xlu0 %63 }
  0x89   :  { %v65_v20 = vrot.slane %v64_v19, 4  ;;  %v49_v21 = vrot.slane %v48_v18, 1 }
  0x8b   :  { %v66_v22 = vadd.f32 %v65_v20, %v64_v19  ;;  %v50_v23 = vadd.f32 %v49_v21, %v48_v18 }
  0x8d   :  { %v67_v24 = vrot.slane %v66_v22, 2  ;;  %101 = vpush %v50_v23 }
  0x8f   :  { %v68_v25 = vadd.f32 %v67_v24, %v66_v22 }
  0x91   :  { %v69_v26 = vrot.slane %v68_v25, 1 }
  0x93   :  { %v70_v27 = vadd.f32 %v69_v26, %v68_v25 }
  0x95   :  { %103 = vpush %v70_v27 }
  0xbe   :  { %s102_s0 = spop %101 }
  0xbf   :  { %79 = sst [smem:[#allocation6]] %s102_s0 }
  0xc6   :  { %s104_s16 = spop %103 }
  0xc7   :  { %82 = sst [smem:[#allocation6 + $0x1]] %s104_s16 }
  0xc8   :  { %91 = dma.smem_to_hbm %s152_s17, 16, %s89_s15, [#allocation5]  }
  0xc9   :  { %147 = dma.done.wait [#allocation5], 16  }
  0xca   :  { %148 = vsyncadd [#allocation5], 4294967280 }
  0xcb   :  { %96 = sfence }
  0xcc   :  { %97 = vsyncpa [#allocation4], 1 }
  0xcd   :  { %98 = vsyncpa [#allocation5], 1 }

</bundles_post_ra>
